<compile_context>
chip_gen: v7x
topology: tpu7x:2x2x1
jax: 0.10.0
libtpu: 0.0.40
codegen_flags: <defaults>
</compile_context>

<pallas_src>
import functools

import jax
import jax.numpy as jnp
from jax.experimental import pallas as pl
from jax.experimental.pallas import tpu as pltpu


# ---------------------------------------------------------------------------
# Kernels
# ---------------------------------------------------------------------------

def _softmax_and_context(enc, scores, ctx_ref, attn_ref):
    """Softmax over the source dim S and attention-weighted context (f32)."""
    m = jnp.max(scores, axis=-1, keepdims=True)
    e = jnp.exp(scores - m)
    denom = jnp.sum(e, axis=-1, keepdims=True)
    weights = e / denom                                    # (TB, S) f32
    # context[b, h] = sum_s weights[b, s] * enc[b, s, h]   (VPU mul + reduce)
    ctx = jnp.sum(enc * weights[:, :, None], axis=1)       # (TB, H) f32
    attn_ref[...] = weights.astype(attn_ref.dtype)
    ctx_ref[...] = ctx.astype(ctx_ref.dtype)


def _dot_kernel(enc_ref, dec_ref, ctx_ref, attn_ref):
    enc = enc_ref[...]                                     # (TB, S, H)
    dec = dec_ref[...].astype(jnp.float32)                 # (TB, H)
    scores = jnp.sum(enc * dec[:, None, :], axis=-1)       # (TB, S) f32
    _softmax_and_context(enc, scores, ctx_ref, attn_ref)


def _general_kernel(enc_ref, dec_ref, wa_w_ref, ctx_ref, attn_ref):
    enc = enc_ref[...]                                     # (TB, S, H)
    dec = dec_ref[...].astype(jnp.float32)                 # (TB, H)
    wa_w = wa_w_ref[...].astype(jnp.float32)               # (H, H) = (out, in)
    # dec . (enc @ Wa^T + b)  ==  (dec @ Wa) . enc  +  dec . b
    # The bias term is constant over S and softmax-invariant -> drop it.
    q = jnp.dot(dec, wa_w, preferred_element_type=jnp.float32)   # (TB, H)
    scores = jnp.sum(enc * q[:, None, :], axis=-1)          # (TB, S)
    _softmax_and_context(enc, scores, ctx_ref, attn_ref)


def _concat_kernel(enc_ref, va2_ref, ctx_ref, attn_ref):
    enc = enc_ref[...]                                     # (TB, S, H)
    va2 = va2_ref[...].astype(jnp.float32)                 # (1, 1, H) = Va[:, H:]
    # score[s] = va1.tanh(Wa(dec)+b) + va2.tanh(enc[s]) + va_b
    # The dec term and the bias are constant over S (softmax-invariant),
    # so only the encoder term is computed.
    scores = jnp.sum(jnp.tanh(enc) * va2, axis=-1)          # (TB, S)
    _softmax_and_context(enc, scores, ctx_ref, attn_ref)


# ---------------------------------------------------------------------------
# Wrapper
# ---------------------------------------------------------------------------

def _choose_batch_tile(B, S, H, itemsize):
    """Pick a batch-tile size that amortizes grid-step overhead while keeping
    the double-buffered working set well under the scoped VMEM limit on all
    generations (conservative for v7x's 64 MiB VMEM)."""
    budget_bytes = 6 * 1024 * 1024
    per_row = 2 * S * H * itemsize + 2 * (S + H) * 4 + 2 * H * itemsize
    tb = max(1, budget_bytes // per_row)
    if B <= tb:
        return B                       # one block covers the whole batch
    # Sub-full blocks: leading dim of the 2-D dec/ctx/attn blocks must be a
    # multiple of 8 (sublane constraint).
    return max(8, (min(tb, 256) // 8) * 8)
    # TODO(synk): for very long sequences where even TB=8 exceeds the VMEM
    # budget, add an inner S tile with flash-style online softmax.


@functools.partial(jax.jit, static_argnames=('align_method',))
def global_attention(encoder_outputs, decoder_hidden, wa_w, wa_b, va_w, va_b,
                     align_method: str):
    """Pallas implementation of GlobalAttention.forward.

    encoder_outputs: (B, S, H), decoder_hidden: (B, H).
    Returns (context_vector (B, H), attention_weights (B, S)).
    wa_b / va_b are accepted for API parity; they only shift alignment scores
    by a per-row constant and are softmax-invariant.
    """
    B, S, H = encoder_outputs.shape
    out_dtype = encoder_outputs.dtype

    tb = _choose_batch_tile(B, S, H, encoder_outputs.dtype.itemsize)
    b_pad = ((B + tb - 1) // tb) * tb
    if b_pad != B:
        pad = b_pad - B
        encoder_outputs = jnp.pad(encoder_outputs, ((0, pad), (0, 0), (0, 0)))
        decoder_hidden = jnp.pad(decoder_hidden, ((0, pad), (0, 0)))

    enc_spec = pl.BlockSpec((tb, S, H), lambda b: (b, 0, 0))
    dec_spec = pl.BlockSpec((tb, H), lambda b: (b, 0))
    out_specs = (pl.BlockSpec((tb, H), lambda b: (b, 0)),   # context
                 pl.BlockSpec((tb, S), lambda b: (b, 0)))   # attention weights
    out_shape = (jax.ShapeDtypeStruct((b_pad, H), out_dtype),
                 jax.ShapeDtypeStruct((b_pad, S), out_dtype))

    if align_method == 'dot':
        kernel = _dot_kernel
        in_specs = [enc_spec, dec_spec]
        args = (encoder_outputs, decoder_hidden)
    elif align_method == 'general':
        kernel = _general_kernel
        in_specs = [enc_spec, dec_spec,
                    pl.BlockSpec((H, H), lambda b: (0, 0))]
        args = (encoder_outputs, decoder_hidden, wa_w)
    elif align_method == 'concat':
        kernel = _concat_kernel
        va2 = va_w[:, H:].reshape(1, 1, H)     # encoder half of Va weight
        in_specs = [enc_spec,
                    pl.BlockSpec((1, 1, H), lambda b: (0, 0, 0))]
        args = (encoder_outputs, va2)
    else:
        raise ValueError(
            "Invalid attention method. Choose 'dot', 'general', or 'concat'.")

    ctx, attn = pl.pallas_call(
        kernel,
        out_shape=out_shape,
        grid=(b_pad // tb,),
        in_specs=in_specs,
        out_specs=out_specs,
        compiler_params=pltpu.CompilerParams(
            dimension_semantics=("parallel",)),
    )(*args)

    return ctx[:B], attn[:B]


# ---------------------------------------------------------------------------
# Pure-JAX reference (verification only)
# ---------------------------------------------------------------------------

def _reference(encoder_outputs, decoder_hidden, wa_w, wa_b, va_w, va_b, method):
    if method == 'dot':
        scores = jnp.einsum('bh,bsh->bs', decoder_hidden, encoder_outputs)
    elif method == 'general':
        proj = jnp.einsum('bsh,oh->bso', encoder_outputs, wa_w) + wa_b
        scores = jnp.einsum('bh,bsh->bs', decoder_hidden, proj)
    elif method == 'concat':
        dec_proj = decoder_hidden @ wa_w.T + wa_b              # (B, H)
        B, S, H = encoder_outputs.shape
        dec_exp = jnp.broadcast_to(dec_proj[:, None, :], (B, S, H))
        concat = jnp.concatenate([dec_exp, encoder_outputs], axis=-1)
        scores = jnp.einsum('bsk,ok->bs', jnp.tanh(concat), va_w) + va_b[0]
    else:
        raise ValueError
    weights = jax.nn.softmax(scores, axis=1)
    ctx = jnp.einsum('bs,bsh->bh', weights, encoder_outputs)
    return ctx, weights


if __name__ == "__main__":
    B, S, H = 2, 8, 32

    key = jax.random.PRNGKey(0)
    k_enc, k_dec, k_waw, k_wab, k_vaw, k_vab = jax.random.split(key, 6)

    encoder_outputs = jax.random.normal(k_enc, (B, S, H), dtype=jnp.float32)
    decoder_hidden = jax.random.normal(k_dec, (B, H), dtype=jnp.float32)

    # nn.Linear conventions: weight = (out_features, in_features), bias = (out,)
    wa_w = jax.random.normal(k_waw, (H, H), dtype=jnp.float32) * 0.1
    wa_b = jax.random.normal(k_wab, (H,), dtype=jnp.float32) * 0.1
    va_w = jax.random.normal(k_vaw, (1, 2 * H), dtype=jnp.float32) * 0.1
    va_b = jax.random.normal(k_vab, (1,), dtype=jnp.float32) * 0.1

    ok = True
    for method in ('dot', 'general', 'concat'):
        ctx, attn = global_attention(encoder_outputs, decoder_hidden,
                                     wa_w, wa_b, va_w, va_b, method)
        jax.block_until_ready((ctx, attn))
        ctx_ref, attn_ref = _reference(encoder_outputs, decoder_hidden,
                                       wa_w, wa_b, va_w, va_b, method)
        ok &= bool(jnp.allclose(ctx, ctx_ref, atol=1e-4, rtol=1e-4))
        ok &= bool(jnp.allclose(attn, attn_ref, atol=1e-4, rtol=1e-4))

    if ok:
        print("KERNEL_OK")
    else:
        print("MISMATCH")
</pallas_src>

<mosaic_0001>
module attributes {stable_mosaic.version = 11 : i64} {
  func.func @_dot_kernel(%arg0: i32, %arg1: memref<2x8x32xf32, #tpu.memory_space<vmem>>, %arg2: memref<2x32xf32, #tpu.memory_space<vmem>>, %arg3: memref<2x32xf32, #tpu.memory_space<vmem>>, %arg4: memref<2x8xf32, #tpu.memory_space<vmem>>) attributes {dimension_semantics = [#tpu.dimension_semantics<parallel>], iteration_bounds = array<i64: 1>, scalar_prefetch = 0 : i64, scratch_operands = 0 : i64, tpu.core_type = #tpu.core_type<tc>, window_params = [{transform_indices = @transform_0, window_bounds = array<i64: 2, 8, 32>}, {transform_indices = @transform_1, window_bounds = array<i64: 2, 32>}, {transform_indices = @transform_2, window_bounds = array<i64: 2, 32>}, {transform_indices = @transform_3, window_bounds = array<i64: 2, 8>}]} {
    %c0 = arith.constant 0 : index
    %c0_0 = arith.constant 0 : index
    %c0_1 = arith.constant 0 : index
    %0 = vector.load %arg1[%c0, %c0_0, %c0_1] : memref<2x8x32xf32, #tpu.memory_space<vmem>>, vector<2x8x32xf32>
    %c0_2 = arith.constant 0 : index
    %c0_3 = arith.constant 0 : index
    %1 = vector.load %arg2[%c0_2, %c0_3] : memref<2x32xf32, #tpu.memory_space<vmem>>, vector<2x32xf32>
    %2 = vector.shape_cast %1 : vector<2x32xf32> to vector<2x1x32xf32>
    %3 = vector.broadcast %2 : vector<2x1x32xf32> to vector<2x8x32xf32>
    %4 = arith.mulf %0, %3 : vector<2x8x32xf32>
    %cst = arith.constant dense<0.000000e+00> : vector<2x8xf32>
    %5 = vector.multi_reduction <add>, %4, %cst [2] : vector<2x8x32xf32> to vector<2x8xf32>
    %cst_4 = arith.constant dense<0xFF800000> : vector<2xf32>
    %6 = vector.multi_reduction <maximumf>, %5, %cst_4 [1] : vector<2x8xf32> to vector<2xf32>
    %7 = vector.shape_cast %6 : vector<2xf32> to vector<2x1xf32>
    %8 = vector.broadcast %7 : vector<2x1xf32> to vector<2x8xf32>
    %9 = arith.subf %5, %8 : vector<2x8xf32>
    %10 = math.exp %9 : vector<2x8xf32>
    %cst_5 = arith.constant dense<0.000000e+00> : vector<2xf32>
    %11 = vector.multi_reduction <add>, %10, %cst_5 [1] : vector<2x8xf32> to vector<2xf32>
    %12 = vector.shape_cast %11 : vector<2xf32> to vector<2x1xf32>
    %13 = vector.broadcast %12 : vector<2x1xf32> to vector<2x8xf32>
    %14 = arith.divf %10, %13 : vector<2x8xf32>
    %15 = vector.shape_cast %14 : vector<2x8xf32> to vector<2x8x1xf32>
    %16 = vector.broadcast %15 : vector<2x8x1xf32> to vector<2x8x32xf32>
    %17 = arith.mulf %0, %16 : vector<2x8x32xf32>
    %cst_6 = arith.constant dense<0.000000e+00> : vector<2x32xf32>
    %18 = vector.multi_reduction <add>, %17, %cst_6 [1] : vector<2x8x32xf32> to vector<2x32xf32>
    %c0_7 = arith.constant 0 : index
    %c0_8 = arith.constant 0 : index
    %19 = vector.load %arg4[%c0_7, %c0_8] : memref<2x8xf32, #tpu.memory_space<vmem>>, vector<2x8xf32>
    tpu.vector_store %arg4[%c0_7, %c0_8], %14 {strides = array<i32>} : memref<2x8xf32, #tpu.memory_space<vmem>>, vector<2x8xf32>,
    %c0_9 = arith.constant 0 : index
    %c0_10 = arith.constant 0 : index
    %20 = vector.load %arg3[%c0_9, %c0_10] : memref<2x32xf32, #tpu.memory_space<vmem>>, vector<2x32xf32>
    tpu.vector_store %arg3[%c0_9, %c0_10], %18 {strides = array<i32>} : memref<2x32xf32, #tpu.memory_space<vmem>>, vector<2x32xf32>,
    return
  }
  func.func @transform_0(%arg0: i32) -> (i32, i32, i32) {
    %c0_i32 = arith.constant 0 : i32
    %c0_i32_0 = arith.constant 0 : i32
    %c0_i32_1 = arith.constant 0 : i32
    return %arg0, %c0_i32, %c0_i32_0 : i32, i32, i32
  }
  func.func @transform_1(%arg0: i32) -> (i32, i32) {
    %c0_i32 = arith.constant 0 : i32
    %c0_i32_0 = arith.constant 0 : i32
    return %arg0, %c0_i32 : i32, i32
  }
  func.func @transform_2(%arg0: i32) -> (i32, i32) {
    %c0_i32 = arith.constant 0 : i32
    %c0_i32_0 = arith.constant 0 : i32
    return %arg0, %c0_i32 : i32, i32
  }
  func.func @transform_3(%arg0: i32) -> (i32, i32) {
    %c0_i32 = arith.constant 0 : i32
    %c0_i32_0 = arith.constant 0 : i32
    return %arg0, %c0_i32 : i32, i32
  }
}

</mosaic_0001>

<bundles_post_ra>
// kernel: global_attention.1
= control target key start
LH: loop header
LB: loop body
LE: loop exit
PB: predicated region body
PF: predicated region fallthrough
CT: control target
= control target key end

     0   :  { %9 = vsyncpa [#allocation3], 0  ;;  %s393_s0 = inlined_call_operand.hbm [shape: f32[2,8,32], index: 0, kind: input, shape index: {}]   ;;  %s394_s1 = inlined_call_operand.vmem [shape: f32[2,32], index: 1, kind: input, shape index: {}]   ;;  %s395_s2 = inlined_call_operand.hbm [shape: f32[2,32], index: 2, kind: output, shape index: {0}]   ;;  %s396_s3 = inlined_call_operand.hbm [shape: f32[2,8], index: 3, kind: output, shape index: {1}]  }
   0x1   :  { %10 = vsyncpa [#allocation4], 0 }
   0x2   :  { %11 = vsyncpa [#allocation7], 0  ;;  %s308_s12 = smov [#allocation2]   ;;  %s236_s16 = scalar_lea.hbm %s393_s0, 256 }
   0x3   :  { %s17_s13 = sshll.u32 %s308_s12, 4  ;;  %p237_p0 = scmp.ne.s32.totalorder %s393_s0, %s236_s16  ;;  %s18_s13 = int_to_ptr.vmem [resolvable:$true] %s17_s13 }
   0x4   :  { %p240_p1 = scmp.lt.u32.totalorder %s236_s16, %s393_s0 }
   0x6   :  { %p242_p2 = pnand %p240_p1, %p237_p0 }
   0x8   :  { %245 = shalt.err (!%p242_p2)
}
   0x9   :  { %s246_s21 = scalar_lea.vmem %s18_s13, 256  ;;  %p251_p4 = scmp.lt.s32.totalorder %s18_s13, %s18_s13 }
   0xa   :  { %p247_p3 = scmp.ne.s32.totalorder %s18_s13, %s246_s21  ;;  %p252_p5 = scmp.lt.s32.totalorder %s246_s21, %s246_s21 }
   0xc   :  { %p253_p6 = por %p252_p5, %p251_p4 }
   0xe   :  { %p254_p7 = pnand %p253_p6, %p247_p3 }
  0x10   :  { %257 = shalt.err (!%p254_p7)
}
  0x11   :  { %s309_s22 = smov 128   ;;  %s310_s23 = smov 8  }
  0x12   :  { %23 = dma.hbm_to_vmem [thread:$0]  %s393_s0, 256, %s18_s13, [#allocation3], %s309_s22, %s309_s22, %s310_s23  }
  0x13   :  { %302 = dma.done.wait [#allocation3], 256  }
  0x14   :  { %303 = vsyncadd [#allocation3], 4294967040  ;;  %v44_v0 = vlaneseq  ;;  %v311_v1 = vmov 1966171168   ;;  %v29_v12 = vld [vmem:[#allocation2] sm:$0xff]  ;;  %vm67_vm0 = vcmask 261120  }
  0x15   :  { %v42_v2 = vunpack.c.l.s4 %v311_v1  ;;  %v218_v9 = vld.sshfl [vmem:[%s394_s1] sm:$0x11 pattern:$0x75316420]  ;;  %v30_v15 = vld [vmem:[#allocation2 + $0x8] sm:$0xff]  ;;  %vm86_vm1 = vcmask 1041409  }
  0x16   :  { %v45_v3 = vshrl.u32 %v44_v0, 7  ;;  %v77_v4 = vand.u32 127, %v44_v0  ;;  %v40_v10 = vcombine.high %v218_v9, %v218_v9  ;;  %vm89_vm2 = vcmask 58368   ;;  %s313_s0 = smov [#allocation6]  }
  0x17   :  { %v43_v5 = vunpack.c.0.s8 %v42_v2  ;;  %v312_v27 = vmov 0   ;;  %s205_s1 = sshll.u32 %s313_s0, 4  ;;  %s206_s1 = int_to_ptr.vmem [resolvable:$true] %s205_s1 }
  0x18   :  { %v347_v6 = vsub.s32 %v77_v4, %v45_v3  ;;  %v57_v8 = vsub.s32 0, %v45_v3  ;;  %227 = vset.pattern.permute.xlu0 %v312_v27  ;;  %226 = vset.pattern.permute.xlu1 %v312_v27  ;;  %v100_v28 = vsub.s32 1, %v45_v3  ;;  %s258_s28 = scalar_lea.vmem %s206_s1, 32  ;;  %p263_p9 = scmp.lt.s32.totalorder %s206_s1, %s206_s1 }
  0x19   :  { %v46_v7 = vsub.s32 %v43_v5, %v45_v3  ;;  %p259_p8 = scmp.ne.s32.totalorder %s206_s1, %s258_s28  ;;  %p264_p10 = scmp.lt.s32.totalorder %s258_s28, %s258_s28 }
  0x1b   :  { %v47_v11 = vrot.slane %v218_v9, %v46_v7  ;;  %v54_v14 = vrot.slane %v40_v10, %v46_v7  ;;  %p265_p11 = por %p264_p10, %p263_p9 }
  0x1d   :  { %v58_v13 = vrot.slane %v47_v11, %v57_v8  ;;  %v62_v17 = vrot.slane %v54_v14, %v57_v8  ;;  %p266_p12 = pnand %p265_p11, %p259_p8 }
  0x1f   :  { %v65_v16 = vmul.f32 %v58_v13, %v29_v12  ;;  %v66_v19 = vmul.f32 %v62_v17, %v30_v15 }
  0x21   :  { %v68_v18 = vsel %vm67_vm0, %v65_v16, 0.0  ;;  %v71_v20 = vsel %vm67_vm0, %v66_v19, 0.0 }
  0x22   :  { %69 = vadd.xlane.f32.xlu0 %v68_v18 }
  0x26   :  { %72 = vadd.xlane.f32.xlu0 %v71_v20 }
  0xaf   :  { %v70_v21 = vpop.xlane.xlu0 %69 }
  0xb0   :  { %v81_v23 = vrot.slane %v70_v21, %v347_v6 }
  0xb3   :  { %v73_v22 = vpop.xlane.xlu0 %72 }
  0xb4   :  { %v85_v24 = vrot.slane %v73_v22, %v347_v6 }
  0xb6   :  { %v87_v25 = vsel %vm86_vm1, %v85_v24, %v81_v23 }
  0xb7   :  { %v90_v26 = vsel %vm89_vm2, %v87_v25, -inf }
  0xb8   :  { %91 = vmax.xlane.f32.xlu1 %v90_v26 }
 0x145   :  { %v92_v29 = vpop.xlane.xlu1 %91 }
 0x146   :  { %v97_v30 = vrot.slane %v92_v29, %v57_v8  ;;  %v101_v31 = vrot.slane %v92_v29, %v100_v28 }
 0x148   :  { %v104_v32 = vsub.f32 %v70_v21, %v97_v30  ;;  %v105_v33 = vsub.f32 %v73_v22, %v101_v31 }
 0x14a   :  { %v106_v34 = vmul.f32 1.442695, %v104_v32  ;;  %v108_v35 = vmul.f32 1.442695, %v105_v33 }
 0x14c   :  { %228 = vpow2.f32 %v106_v34 }
 0x14d   :  { %230 = vpow2.f32 %v108_v35 }
 0x156   :  { %v229_v36 = vpop.eup %228 }
 0x157   :  { %v231_v37 = vpop.eup %230  ;;  %113 = vperm.xlu1 %226, %v229_v36  }
 0x158   :  { %116 = vperm.xlu0 %227, %v231_v37  }
 0x1d6   :  { %v114_v38 = vpop.permute.xlu1 %113 }
 0x1d7   :  { %v117_v39 = vpop.permute.xlu0 %116  ;;  %v121_v40 = vrot.slane %v114_v38, %v347_v6 }
 0x1d8   :  { %v125_v41 = vrot.slane %v117_v39, %v347_v6 }
 0x1da   :  { %v126_v42 = vsel %vm86_vm1, %v125_v41, %v121_v40 }
 0x1db   :  { %v128_v43 = vsel %vm89_vm2, %v126_v42, 0.0 }
 0x1dc   :  { %129 = vadd.xlane.f32.xlu1 %v128_v43 }
 0x269   :  { %v130_v44 = vpop.xlane.xlu1 %129 }
 0x26a   :  { %v135_v45 = vrot.slane %v130_v44, %v57_v8  ;;  %v139_v46 = vrot.slane %v130_v44, %v100_v28 }
 0x26c   :  { %232 = vrcp.f32 %v135_v45 }
 0x26d   :  { %234 = vrcp.f32 %v139_v46 }
 0x276   :  { %v233_v47 = vpop.eup %232 }
 0x277   :  { %v143_v48 = vmul.f32 %v233_v47, %v229_v36  ;;  %v235_v49 = vpop.eup %234 }
 0x278   :  { %v145_v50 = vmul.f32 %v235_v49, %v231_v37 }
 0x279   :  { %148 = vperm.xlu0 %227, %v143_v48  }
 0x27d   :  { %153 = vperm.xlu0 %227, %v145_v50  }
 0x2f8   :  { %v149_v51 = vpop.permute.xlu0 %148 }
 0x2f9   :  { %v156_v52 = vmul.f32 %v149_v51, %v29_v12  ;;  %v175_v56 = vrot.slane %v149_v51, %v347_v6 }
 0x2fb   :  { %v158_v53 = vsel %vm67_vm0, %v156_v52, 0.0 }
 0x2fc   :  { %v159_v54 = vrot.slane %v158_v53, 4  ;;  %v154_v55 = vpop.permute.xlu0 %153 }
 0x2fd   :  { %v157_v57 = vmul.f32 %v154_v55, %v30_v15  ;;  %v179_v58 = vrot.slane %v154_v55, %v347_v6 }
 0x2fe   :  { %v160_v59 = vadd.f32 %v159_v54, %v158_v53 }
 0x2ff   :  { %v165_v60 = vsel %vm67_vm0, %v157_v57, 0.0  ;;  %v180_v61 = vsel %vm86_vm1, %v179_v58, %v175_v56 }
 0x300   :  { %v161_v62 = vrot.slane %v160_v59, 2  ;;  %v166_v63 = vrot.slane %v165_v60, 4  ;;  %182 = vst.msk [vmem:[#allocation6] sm:$0x3] %vm89_vm2, %v180_v61 }
 0x301   :  { %269 = shalt.err (!%p266_p12)
}
 0x302   :  { %s270_s4 = scalar_lea.hbm %s396_s3, 32 }
 0x303   :  { %p271_p13 = scmp.ne.s32.totalorder %s396_s3, %s270_s4  ;;  %p274_p0 = scmp.lt.u32.totalorder %s270_s4, %s396_s3 }
 0x305   :  { %p276_p1 = pnand %p274_p0, %p271_p13 }
 0x307   :  { %279 = shalt.err (!%p276_p1)
}
 0x308   :  { %208 = dma.vmem_to_hbm [thread:$0]  %s206_s1, 32, %s396_s3, [#allocation7]   ;;  %v162_v0 = vadd.f32 %v161_v62, %v160_v59  ;;  %v167_v1 = vadd.f32 %v166_v63, %v165_v60  ;;  %vm187_vm3 = vcmask 254976  }
 0x309   :  { %s314_s11 = smov [#allocation5]  }
 0x30a   :  { %v168_v2 = vrot.slane %v167_v1, 2  ;;  %v163_v3 = vrot.slane %v162_v0, 1  ;;  %s195_s12 = sshll.u32 %s314_s11, 4  ;;  %s196_s12 = int_to_ptr.vmem [resolvable:$true] %s195_s12 }
 0x30b   :  { %s280_s13 = scalar_lea.vmem %s196_s12, 32  ;;  %p285_p3 = scmp.lt.s32.totalorder %s196_s12, %s196_s12 }
 0x30c   :  { %v169_v4 = vadd.f32 %v168_v2, %v167_v1  ;;  %v164_v7 = vadd.f32 %v163_v3, %v162_v0  ;;  %p281_p2 = scmp.ne.s32.totalorder %s196_s12, %s280_s13  ;;  %p286_p4 = scmp.lt.s32.totalorder %s280_s13, %s280_s13 }
 0x30e   :  { %v170_v5 = vrot.slane %v169_v4, 1  ;;  %p287_p5 = por %p286_p4, %p285_p3 }
 0x310   :  { %v171_v6 = vadd.f32 %v170_v5, %v169_v4  ;;  %p288_p6 = pnand %p287_p5, %p281_p2 }
 0x312   :  { %v185_v8 = vsel %vm86_vm1, %v171_v6, %v164_v7 }
 0x313   :  { %188 = vst.msk [vmem:[#allocation5] sm:$0x3] %vm187_vm3, %v185_v8 }
 0x314   :  { %291 = shalt.err (!%p288_p6)
}
 0x315   :  { %s292_s15 = scalar_lea.hbm %s395_s2, 32 }
 0x316   :  { %p293_p7 = scmp.ne.s32.totalorder %s395_s2, %s292_s15  ;;  %p296_p8 = scmp.lt.u32.totalorder %s292_s15, %s395_s2 }
 0x318   :  { %p298_p9 = pnand %p296_p8, %p293_p7 }
 0x31a   :  { %301 = shalt.err (!%p298_p9)
}
 0x31b   :  { %198 = dma.vmem_to_hbm [thread:$0]  %s196_s12, 32, %s395_s2, [#allocation4]  }
 0x31c   :  { %304 = dma.done.wait [#allocation4], 32  }
 0x31d   :  { %305 = vsyncadd [#allocation4], 4294967264 }
 0x31e   :  { %306 = dma.done.wait [#allocation7], 32  }
 0x31f   :  { %307 = vsyncadd [#allocation7], 4294967264 }
 0x320   :  { %215 = vsyncpa [#allocation3], 1 }
 0x321   :  { %216 = vsyncpa [#allocation4], 1 }
 0x322   :  { %217 = vsyncpa [#allocation7], 1 }

</bundles_post_ra>
